<compile_context>
chip_gen: v7x
topology: tpu7x:2x2x1
jax: 0.10.0
libtpu: 0.0.40
codegen_flags: <defaults>
</compile_context>

<pallas_src>
import functools

import jax
import jax.numpy as jnp
from jax.experimental import pallas as pl
from jax.experimental.pallas import tpu as pltpu

_EPS = 1e-8  # matches the module's `union + 1e-08`


def _dice_partial_kernel(pred_ref, tgt_ref, inter_out, usum_out,
                         inter_acc, usum_acc, *,
                         do_softmax, analytic_tsum, needs_mask,
                         d_total, tile_d, nd_g):
    d = pl.program_id(2)

    @pl.when(d == 0)
    def _():
        inter_acc[...] = jnp.zeros_like(inter_acc)
        usum_acc[...] = jnp.zeros_like(usum_acc)

    p = pred_ref[0].astype(jnp.float32)   # (C, tD) f32 accumulation
    t = tgt_ref[0].astype(jnp.float32)    # (C, tD) int8 one-hot -> f32 (exact)

    if do_softmax:
        # softmax over the channel (sublane) axis, independently per spatial lane
        m = jnp.max(p, axis=0, keepdims=True)
        e = jnp.exp(p - m)                              # EUP
        s = jnp.sum(e, axis=0, keepdims=True)           # XLU cross-sublane reduce
        p = e * pl.reciprocal(s, approx=True)           # EUP reciprocal, no VALU div

    if needs_mask:
        # ragged last tile (and nothing else): zero out-of-range lanes
        d_block = pl.program_id(1) * nd_g + d
        valid = d_total - d_block * tile_d
        lane = jax.lax.broadcasted_iota(jnp.int32, (1, tile_d), 1)
        keep = lane < valid
        p = jnp.where(keep, p, 0.0)
        t = jnp.where(keep, t, 0.0)

    # per-lane (spatial) partial sums, reduced over channels only
    inter_acc[...] += jnp.sum(p * t, axis=0, keepdims=True)   # (1, tD)
    usum = jnp.sum(p, axis=0, keepdims=True)
    if not analytic_tsum:
        usum = usum + jnp.sum(t, axis=0, keepdims=True)
    usum_acc[...] += usum

    @pl.when(d == pl.num_programs(2) - 1)
    def _():
        inter_out[...] = jnp.broadcast_to(jnp.sum(inter_acc[...]), inter_out.shape)
        usum_out[...] = jnp.broadcast_to(jnp.sum(usum_acc[...]), usum_out.shape)


def _vmem_capacity_bytes():
    try:
        info = pltpu.get_tpu_info()
        cap = int(getattr(info, "vmem_capacity_bytes", 0) or 0)
        if cap > 0:
            return cap
    except Exception:
        pass
    return 64 * 1024 * 1024   # conservative fallback: v7x per-TensorCore VMEM


def _choose_tiling(d_total, bytes_per_d, batch, max_tile_d=None):
    """Pick the spatial tile size from the per-chip VMEM budget."""
    budget = max(4 << 20, _vmem_capacity_bytes() // 6)       # ~21 MiB v5e/v6e, ~10.7 MiB v7x
    tile_cap = max(128, (budget // max(bytes_per_d, 1)) // 128 * 128)
    if max_tile_d is not None:
        tile_cap = min(tile_cap, max(128, max_tile_d // 128 * 128))
    if batch == 1 and d_total > 2 * 128:
        # B==1: prefer >=2 tiles so the D axis can be split across both v7x cores
        half = (((d_total + 1) // 2) + 127) // 128 * 128
        tile_cap = min(tile_cap, half)
    tile_d = d_total if d_total <= tile_cap else tile_cap
    nd_total = -(-d_total // tile_d)
    splits = 2 if (batch == 1 and nd_total >= 2 and nd_total % 2 == 0) else 1
    nd_g = nd_total // splits
    return tile_d, nd_total, splits, nd_g


def dice_loss(prediction, target, n_target_classes, do_softmax=True,
              *, cast_pred_to_bf16=False, max_tile_d=None):
    """JAX/Pallas equivalent of DiceLoss.forward for NCHW predictions."""
    if prediction.ndim != 4:
        raise RuntimeError("prediction must be (B, C, H, W)")
    B, C, H, W = prediction.shape
    if C != n_target_classes:
        raise RuntimeError("prediction channel dim must equal n_target_classes")

    analytic_tsum = False
    if target.shape[1] != n_target_classes:
        if target.shape[1] == 1:
            target = jnp.squeeze(target, axis=1)
        if target.ndim != 3:
            raise RuntimeError(
                f"target shape must be (B, H, W) to do one-hot encoding. "
                f"Got target.shape: '{target.shape}'")
        tshape = target.shape
        # int8 one-hot is exact (0/1) and minimizes the target HBM stream.
        target = jax.nn.one_hot(target, n_target_classes, dtype=jnp.int8)
        # Raw reshape (NOT a transpose) of the (B,H,W,C) buffer into (B,C,H,W),
        # exactly matching the PyTorch module's `.reshape(...)` behaviour.
        target = target.reshape(tshape[0], n_target_classes, *tshape[1:])
        analytic_tsum = True   # sum(one-hot) == H*W exactly; reshape-invariant

    D = H * W
    pred = prediction
    if cast_pred_to_bf16:
        pred = pred.astype(jnp.bfloat16)   # optional: halves the dominant HBM stream
    pred = pred.reshape(B, C, D)
    tgt = target.reshape(B, C, D)

    # live bytes per spatial element: double-buffered inputs + 2 f32 accumulators
    bytes_per_d = 2 * C * (pred.dtype.itemsize + tgt.dtype.itemsize) + 2 * 4
    tile_d, nd_total, S, nd_g = _choose_tiling(D, bytes_per_d, B, max_tile_d)
    needs_mask = (D % tile_d) != 0

    kernel = functools.partial(
        _dice_partial_kernel,
        do_softmax=bool(do_softmax), analytic_tsum=analytic_tsum,
        needs_mask=needs_mask, d_total=D, tile_d=tile_d, nd_g=nd_g)

    vmem_limit = int(max(16 << 20, bytes_per_d * tile_d + (2 << 20)))

    cost = pl.CostEstimate(
        flops=int((10 if do_softmax else 4) * B * C * D),
        transcendentals=int(B * C * D) if do_softmax else 0,
        bytes_accessed=int(pred.size * pred.dtype.itemsize
                           + tgt.size * tgt.dtype.itemsize
                           + 2 * B * S * 8 * 128 * 4),
    )

    in_map = lambda b, s, d: (b, 0, s * nd_g + d)
    out_map = lambda b, s, d: (b, s, 0, 0)

    inter_p, usum_p = pl.pallas_call(
        kernel,
        out_shape=(jax.ShapeDtypeStruct((B, S, 8, 128), jnp.float32),
                   jax.ShapeDtypeStruct((B, S, 8, 128), jnp.float32)),
        grid=(B, S, nd_g),
        in_specs=[
            pl.BlockSpec((1, C, tile_d), in_map),
            pl.BlockSpec((1, C, tile_d), in_map),
        ],
        out_specs=(
            pl.BlockSpec((1, 1, 8, 128), out_map),
            pl.BlockSpec((1, 1, 8, 128), out_map),
        ),
        scratch_shapes=[
            pltpu.VMEM((1, tile_d), jnp.float32),   # intersection per-lane partials
            pltpu.VMEM((1, tile_d), jnp.float32),   # pred(+target)-sum per-lane partials
        ],
        compiler_params=pltpu.CompilerParams(
            dimension_semantics=("parallel", "parallel", "arbitrary"),
            vmem_limit_bytes=vmem_limit),
        cost_estimate=cost,
    )(pred, tgt)

    # tiny epilogue in the wrapper: combine per-(batch, split) partials
    inter = jnp.sum(inter_p[:, :, 0, 0], axis=1)          # (B,)
    union = jnp.sum(usum_p[:, :, 0, 0], axis=1)           # (B,)
    if analytic_tsum:
        union = union + jnp.float32(D)                     # exact one-hot target sum
    dice = 2.0 * inter / (union + _EPS)
    return jnp.sum(dice)


def _reference(prediction, target, n_target_classes, do_softmax=True):
    """Pure-JAX mirror of the PyTorch DiceLoss.forward (for verification)."""
    B = prediction.shape[0]
    tgt = target
    if tgt.shape[1] != n_target_classes:
        if tgt.shape[1] == 1:
            tgt = jnp.squeeze(tgt, axis=1)
        tshape = tgt.shape
        tgt = jax.nn.one_hot(tgt, n_target_classes, dtype=jnp.float32)
        tgt = tgt.reshape(tshape[0], n_target_classes, *tshape[1:])
    pred = prediction.astype(jnp.float32)
    if do_softmax:
        pred = jax.nn.softmax(pred, axis=1)  # torch F.softmax implicit dim == 1 for 4-D
    pred = pred.reshape(B, -1)
    tgt = tgt.reshape(B, -1).astype(jnp.float32)
    inter = jnp.sum(pred * tgt, axis=1)
    union = jnp.sum(pred, axis=1) + jnp.sum(tgt, axis=1)
    dice = 2.0 * inter / (union + 1e-8)
    return jnp.sum(dice)


if __name__ == "__main__":
    key = jax.random.PRNGKey(0)
    k_pred, k_tgt, k_pred2, k_tgt2 = jax.random.split(key, 4)

    # Case 1: (B,C,H,W) logits + (B,H,W) integer labels (one-hot path).
    B, C, H, W = 2, 4, 16, 16
    prediction = jax.random.normal(k_pred, (B, C, H, W), dtype=jnp.float32)
    target = jax.random.randint(k_tgt, (B, H, W), 0, C, dtype=jnp.int32)

    loss = dice_loss(prediction, target, n_target_classes=C, do_softmax=True)
    jax.block_until_ready(loss)
    ref = _reference(prediction, target, n_target_classes=C, do_softmax=True)
    assert jnp.abs(loss - ref) < 1e-3 * max(1.0, float(jnp.abs(ref))), (loss, ref)

    # Case 2: B=1, non-128-divisible spatial size (D = 448) with a forced small
    # tile -> exercises the ragged-tile mask and the two-way D split (v7x).
    B2, H2, W2 = 1, 16, 28
    prediction2 = jax.random.normal(k_pred2, (B2, C, H2, W2), dtype=jnp.float32)
    target2 = jax.random.randint(k_tgt2, (B2, H2, W2), 0, C, dtype=jnp.int32)
    loss2 = dice_loss(prediction2, target2, n_target_classes=C,
                      do_softmax=True, max_tile_d=128)
    jax.block_until_ready(loss2)
    ref2 = _reference(prediction2, target2, n_target_classes=C, do_softmax=True)
    assert jnp.abs(loss2 - ref2) < 1e-3 * max(1.0, float(jnp.abs(ref2))), (loss2, ref2)

    print("KERNEL_OK")
</pallas_src>

<mosaic_0001>
module attributes {stable_mosaic.version = 11 : i64} {
  func.func @_dice_partial_kernel(%arg0: i32, %arg1: i32, %arg2: i32, %arg3: memref<1x4x256xf32, #tpu.memory_space<vmem>>, %arg4: memref<1x4x256xi8, #tpu.memory_space<vmem>>, %arg5: memref<1x1x8x128xf32, #tpu.memory_space<vmem>>, %arg6: memref<1x1x8x128xf32, #tpu.memory_space<vmem>>, %arg7: memref<1x256xf32, #tpu.memory_space<vmem>>, %arg8: memref<1x256xf32, #tpu.memory_space<vmem>>) attributes {dimension_semantics = [#tpu.dimension_semantics<parallel>, #tpu.dimension_semantics<parallel>, #tpu.dimension_semantics<arbitrary>], iteration_bounds = array<i64: 2, 1, 1>, scalar_prefetch = 0 : i64, scratch_operands = 2 : i64, tpu.core_type = #tpu.core_type<tc>, window_params = [{transform_indices = @transform_0, window_bounds = array<i64: 1, 4, 256>}, {transform_indices = @transform_1, window_bounds = array<i64: 1, 4, 256>}, {transform_indices = @transform_2, window_bounds = array<i64: 1, 1, 8, 128>}, {transform_indices = @transform_3, window_bounds = array<i64: 1, 1, 8, 128>}]} {
    %c0_i32 = arith.constant 0 : i32
    %0 = arith.cmpi eq, %arg2, %c0_i32 : i32
    %1 = arith.extui %0 : i1 to i32
    %c0_i32_0 = arith.constant 0 : i32
    %2 = arith.cmpi ne, %1, %c0_i32_0 : i32
    scf.if %2 {
      %cst_19 = arith.constant 0.000000e+00 : f32
      %32 = vector.broadcast %cst_19 : f32 to vector<1x256xf32>
      %c0_20 = arith.constant 0 : index
      %c0_21 = arith.constant 0 : index
      %33 = vector.load %arg7[%c0_20, %c0_21] : memref<1x256xf32, #tpu.memory_space<vmem>>, vector<1x256xf32>
      tpu.vector_store %arg7[%c0_20, %c0_21], %32 {strides = array<i32>} : memref<1x256xf32, #tpu.memory_space<vmem>>, vector<1x256xf32>,
      %cst_22 = arith.constant 0.000000e+00 : f32
      %34 = vector.broadcast %cst_22 : f32 to vector<1x256xf32>
      %c0_23 = arith.constant 0 : index
      %c0_24 = arith.constant 0 : index
      %35 = vector.load %arg8[%c0_23, %c0_24] : memref<1x256xf32, #tpu.memory_space<vmem>>, vector<1x256xf32>
      tpu.vector_store %arg8[%c0_23, %c0_24], %34 {strides = array<i32>} : memref<1x256xf32, #tpu.memory_space<vmem>>, vector<1x256xf32>,
    } else {
    }
    %c0 = arith.constant 0 : index
    %c0_1 = arith.constant 0 : index
    %c0_2 = arith.constant 0 : index
    %3 = vector.load %arg3[%c0, %c0_1, %c0_2] : memref<1x4x256xf32, #tpu.memory_space<vmem>>, vector<1x4x256xf32>
    %4 = vector.shape_cast %3 : vector<1x4x256xf32> to vector<4x256xf32>
    %c0_3 = arith.constant 0 : index
    %c0_4 = arith.constant 0 : index
    %c0_5 = arith.constant 0 : index
    %5 = vector.load %arg4[%c0_3, %c0_4, %c0_5] : memref<1x4x256xi8, #tpu.memory_space<vmem>>, vector<1x4x256xi8>
    %6 = vector.shape_cast %5 : vector<1x4x256xi8> to vector<4x256xi8>
    %7 = arith.sitofp %6 : vector<4x256xi8> to vector<4x256xf32>
    %cst = arith.constant dense<0xFF800000> : vector<256xf32>
    %8 = vector.multi_reduction <maximumf>, %4, %cst [0] : vector<4x256xf32> to vector<256xf32>
    %9 = vector.shape_cast %8 : vector<256xf32> to vector<1x256xf32>
    %10 = vector.broadcast %9 : vector<1x256xf32> to vector<4x256xf32>
    %11 = arith.subf %4, %10 : vector<4x256xf32>
    %12 = math.exp %11 : vector<4x256xf32>
    %cst_6 = arith.constant dense<0.000000e+00> : vector<256xf32>
    %13 = vector.multi_reduction <add>, %12, %cst_6 [0] : vector<4x256xf32> to vector<256xf32>
    %14 = vector.shape_cast %13 : vector<256xf32> to vector<1x256xf32>
    %15 = tpu.reciprocal %14 {approx = true} : vector<1x256xf32> -> vector<1x256xf32>
    %16 = vector.broadcast %15 : vector<1x256xf32> to vector<4x256xf32>
    %17 = arith.mulf %12, %16 : vector<4x256xf32>
    %c0_7 = arith.constant 0 : index
    %c0_8 = arith.constant 0 : index
    %18 = vector.load %arg7[%c0_7, %c0_8] : memref<1x256xf32, #tpu.memory_space<vmem>>, vector<1x256xf32>
    %19 = arith.mulf %17, %7 : vector<4x256xf32>
    %cst_9 = arith.constant dense<0.000000e+00> : vector<256xf32>
    %20 = vector.multi_reduction <add>, %19, %cst_9 [0] : vector<4x256xf32> to vector<256xf32>
    %21 = vector.shape_cast %20 : vector<256xf32> to vector<1x256xf32>
    %22 = arith.addf %18, %21 : vector<1x256xf32>
    %c0_10 = arith.constant 0 : index
    %c0_11 = arith.constant 0 : index
    %23 = vector.load %arg7[%c0_10, %c0_11] : memref<1x256xf32, #tpu.memory_space<vmem>>, vector<1x256xf32>
    tpu.vector_store %arg7[%c0_10, %c0_11], %22 {strides = array<i32>} : memref<1x256xf32, #tpu.memory_space<vmem>>, vector<1x256xf32>,
    %cst_12 = arith.constant dense<0.000000e+00> : vector<256xf32>
    %24 = vector.multi_reduction <add>, %17, %cst_12 [0] : vector<4x256xf32> to vector<256xf32>
    %25 = vector.shape_cast %24 : vector<256xf32> to vector<1x256xf32>
    %c0_13 = arith.constant 0 : index
    %c0_14 = arith.constant 0 : index
    %26 = vector.load %arg8[%c0_13, %c0_14] : memref<1x256xf32, #tpu.memory_space<vmem>>, vector<1x256xf32>
    %27 = arith.addf %26, %25 : vector<1x256xf32>
    %c0_15 = arith.constant 0 : index
    %c0_16 = arith.constant 0 : index
    %28 = vector.load %arg8[%c0_15, %c0_16] : memref<1x256xf32, #tpu.memory_space<vmem>>, vector<1x256xf32>
    tpu.vector_store %arg8[%c0_15, %c0_16], %27 {strides = array<i32>} : memref<1x256xf32, #tpu.memory_space<vmem>>, vector<1x256xf32>,
    %c0_i32_17 = arith.constant 0 : i32
    %29 = arith.cmpi eq, %arg2, %c0_i32_17 : i32
    %30 = arith.extui %29 : i1 to i32
    %c0_i32_18 = arith.constant 0 : i32
    %31 = arith.cmpi ne, %30, %c0_i32_18 : i32
    scf.if %31 {
      %c0_19 = arith.constant 0 : index
      %c0_20 = arith.constant 0 : index
      %32 = vector.load %arg7[%c0_19, %c0_20] : memref<1x256xf32, #tpu.memory_space<vmem>>, vector<1x256xf32>
      %33 = vector.shape_cast %32 : vector<1x256xf32> to vector<1x1x256xf32>
      %cst_21 = arith.constant dense<0.000000e+00> : vector<1xf32>
      %34 = vector.multi_reduction <add>, %33, %cst_21 [1, 2] : vector<1x1x256xf32> to vector<1xf32>
      %35 = vector.shape_cast %34 : vector<1xf32> to vector<1x1x1xf32>
      %36 = vector.extract %35[0, 0, 0] : f32 from vector<1x1x1xf32>
      %37 = vector.broadcast %36 : f32 to vector<1x1x8x128xf32>
      %c0_22 = arith.constant 0 : index
      %c0_23 = arith.constant 0 : index
      %c0_24 = arith.constant 0 : index
      %c0_25 = arith.constant 0 : index
      %38 = vector.load %arg5[%c0_22, %c0_23, %c0_24, %c0_25] : memref<1x1x8x128xf32, #tpu.memory_space<vmem>>, vector<1x1x8x128xf32>
      tpu.vector_store %arg5[%c0_22, %c0_23, %c0_24, %c0_25], %37 {strides = array<i32>} : memref<1x1x8x128xf32, #tpu.memory_space<vmem>>, vector<1x1x8x128xf32>,
      %c0_26 = arith.constant 0 : index
      %c0_27 = arith.constant 0 : index
      %39 = vector.load %arg8[%c0_26, %c0_27] : memref<1x256xf32, #tpu.memory_space<vmem>>, vector<1x256xf32>
      %40 = vector.shape_cast %39 : vector<1x256xf32> to vector<1x1x256xf32>
      %cst_28 = arith.constant dense<0.000000e+00> : vector<1xf32>
      %41 = vector.multi_reduction <add>, %40, %cst_28 [1, 2] : vector<1x1x256xf32> to vector<1xf32>
      %42 = vector.shape_cast %41 : vector<1xf32> to vector<1x1x1xf32>
      %43 = vector.extract %42[0, 0, 0] : f32 from vector<1x1x1xf32>
      %44 = vector.broadcast %43 : f32 to vector<1x1x8x128xf32>
      %c0_29 = arith.constant 0 : index
      %c0_30 = arith.constant 0 : index
      %c0_31 = arith.constant 0 : index
      %c0_32 = arith.constant 0 : index
      %45 = vector.load %arg6[%c0_29, %c0_30, %c0_31, %c0_32] : memref<1x1x8x128xf32, #tpu.memory_space<vmem>>, vector<1x1x8x128xf32>
      tpu.vector_store %arg6[%c0_29, %c0_30, %c0_31, %c0_32], %44 {strides = array<i32>} : memref<1x1x8x128xf32, #tpu.memory_space<vmem>>, vector<1x1x8x128xf32>,
    } else {
    }
    return
  }
  func.func @transform_0(%arg0: i32, %arg1: i32, %arg2: i32) -> (i32, i32, i32) {
    %c1_i32 = arith.constant 1 : i32
    %0 = arith.muli %arg1, %c1_i32 : i32
    %1 = arith.addi %0, %arg2 : i32
    %c0_i32 = arith.constant 0 : i32
    %c0_i32_0 = arith.constant 0 : i32
    return %arg0, %c0_i32, %1 : i32, i32, i32
  }
  func.func @transform_1(%arg0: i32, %arg1: i32, %arg2: i32) -> (i32, i32, i32) {
    %c1_i32 = arith.constant 1 : i32
    %0 = arith.muli %arg1, %c1_i32 : i32
    %1 = arith.addi %0, %arg2 : i32
    %c0_i32 = arith.constant 0 : i32
    %c0_i32_0 = arith.constant 0 : i32
    return %arg0, %c0_i32, %1 : i32, i32, i32
  }
  func.func @transform_2(%arg0: i32, %arg1: i32, %arg2: i32) -> (i32, i32, i32, i32) {
    %c0_i32 = arith.constant 0 : i32
    %c0_i32_0 = arith.constant 0 : i32
    %c0_i32_1 = arith.constant 0 : i32
    return %arg0, %arg1, %c0_i32, %c0_i32_0 : i32, i32, i32, i32
  }
  func.func @transform_3(%arg0: i32, %arg1: i32, %arg2: i32) -> (i32, i32, i32, i32) {
    %c0_i32 = arith.constant 0 : i32
    %c0_i32_0 = arith.constant 0 : i32
    %c0_i32_1 = arith.constant 0 : i32
    return %arg0, %arg1, %c0_i32, %c0_i32_0 : i32, i32, i32, i32
  }
}

</mosaic_0001>

<bundles_post_ra>
// kernel: tpu_custom_call.1
= control target key start
LH: loop header
LB: loop body
LE: loop exit
PB: predicated region body
PF: predicated region fallthrough
CT: control target
= control target key end

     0   :  { %9 = vsyncpa [#allocation5], 0  ;;  %s1253_s0 = inlined_call_operand.hbm [shape: f32[2,4,256], index: 0, kind: input, shape index: {}]   ;;  %s1254_s1 = inlined_call_operand.hbm [shape: s8[2,4,256], index: 1, kind: input, shape index: {}]   ;;  %s1255_s2 = inlined_call_operand.hbm [shape: f32[2,1,8,128], index: 2, kind: output, shape index: {0}]   ;;  %s1256_s3 = inlined_call_operand.hbm [shape: f32[2,1,8,128], index: 3, kind: output, shape index: {1}]  }
   0x1   :  { %11 = vsyncpa [#allocation5 + $0x1], 0 }
   0x2   :  { %12 = vsyncpa [#allocation8], 0 }
   0x3   :  { %14 = vsyncpa [#allocation8 + $0x1], 0 }
   0x4   :  { %15 = vsyncpa [#allocation6], 0 }
   0x5   :  { %17 = vsyncpa [#allocation6 + $0x1], 0 }
   0x6   :  { %18 = vsyncpa [#allocation11], 0 }
   0x7   :  { %20 = vsyncpa [#allocation11 + $0x1], 0  ;;  %s971_s12 = smov 0   ;;  %s973_s13 = smov 0  }
   0x8   :  { %s975_s14 = smov 0   ;;  %s977_s15 = smov 0  }
   0x9   :  { %s979_s16 = smov 0   ;;  %s981_s17 = smov 0  }
   0xa LB: > { %s657_s18 = sadd.s32 4294967295, %s943_s17   ;;  %s658_s19 = sadd.s32 4294967294, %s943_s17   ;;  %s943_s17 = sphi %s981_s17, %s26_s17   ;;  %s939_s16 = sphi %s979_s16, %s1278_s16   ;;  %s935_s15 = sphi %s977_s15, %s1277_s15   ;;  %s931_s14 = sphi %s975_s14, %s1276_s14   ;;  %s927_s13 = sphi %s973_s13, %s1275_s13   ;;  %s923_s12 = sphi %s971_s12, %s1274_s12  }
   0xb   : > { %s45_s20 = sadd.s32 1, %s939_s16  ;;  %s56_s21 = sadd.s32 1, %s931_s14 }
   0xc   : > { %p47_p0 = scmp.ge.s32.totalorder %s45_s20, 2  ;;  %p63_p1 = scmp.ne.s32.totalorder %s931_s14, %s927_s13 }
   0xd   : > { %p64_p2 = scmp.eq.s32.totalorder %s943_s17, 0  ;;  %p69_p3 = scmp.ne.s32.totalorder %s927_s13, %s923_s12 }
   0xe   : > { %s1280_s20 = smov (%p47_p0, %s45_s20), 0  ;;  %p70_p5 = scmp.eq.s32.totalorder %s657_s18, 0 }
   0xf   : > { %p1012_p4 = por %p64_p2, %p63_p1  ;;  %s51_s23 = ssub.s32 %s939_s16, %s1280_s20 }
  0x10   : > { %p125_p6 = scmp.eq.s32.totalorder %s657_s18, 1  ;;  %p54_p7 = scmp.eq.s32.totalorder %s51_s23, 0 }
  0x11   : > { %p1018_p8 = por %p70_p5, %p69_p3  ;;  %p131_p10 = scmp.eq.s32.totalorder %s658_s19, 1 }
  0x12   : > { %p1022_p9 = por %p125_p6, %p63_p1  ;;  %p706_p13 = scmp.lt.s32.totalorder %s943_s17, 2 }
  0x13   : > { %s1260_s24 = scalar_select %p1018_p8, 1, 0 }
  0x14   : > { %s1261_s25 = scalar_select %p1022_p9, 1, 0 }
  0x15   : > { %s1027_s26 = scalar_select %p54_p7, %s931_s14, %s56_s21  }
  0x16   : > { %p1029_p11 = por %p131_p10, %p69_p3  ;;  %s1036_s28 = sand.u32 1, %s931_s14  }
  0x17   : > { %s661_s29 = sshll.u32 %s1036_s28, 3  ;;  %s678_s30 = sshll.u32 %s939_s16, 7 }
  0x18   : > { %s1262_s27 = scalar_select %p1029_p11, 1, 0 }
  0x19   : > { %s1043_s6 = scalar_lea.hbm %s1253_s0, %s678_s30  ;;  %s183_s7 = scalar_lea.vmem [#allocation4], %s661_s29 }
  0x1a   : > { %s194_s8 = sshll.u32 %s183_s7, 4  ;;  %p1049_p0 = pnand %p706_p13, %p1012_p4  ;;  %s1045_s8 = int_to_ptr.vmem [resolvable:$true] %s194_s8 }
  0x1b   : > { %s180_s10 = scalar_lea.sflag [#allocation5], %s1036_s28  ;;  %s765_s11 = scalar_lea.hbm %s1043_s6, 128 }
  0x1c   : > { %p766_p3 = scmp.ne.s32.totalorder %s1043_s6, %s765_s11  ;;  %p767_p5 = pneg %p1049_p0 }
  0x1d   : > { %s770_s21 = scalar_lea.hbm %s1253_s0, 256  ;;  %p771_p4 = scmp.lt.u32.totalorder %s1043_s6, %s1253_s0 }
  0x1e   : > { %p768_p6 = pnand %p767_p5, %p766_p3  ;;  %p772_p10 = scmp.lt.u32.totalorder %s770_s21, %s765_s11 }
  0x1f   : > { %p774_p12 = scmp.lt.u32.totalorder %s765_s11, %s1043_s6 }
  0x20   : > { %p769_p7 = pneg %p768_p6  ;;  %p773_p13 = por %p772_p10, %p771_p4 }
  0x22   : > { %p775_p1 = por %p774_p12, %p773_p13 }
  0x24   : > { %p776_p2 = pnand %p775_p1, %p769_p7 }
  0x26   : > { %779 = shalt.err (!%p776_p2)
}
  0x27   : > { %s780_s29 = scalar_lea.vmem %s1045_s8, 128  ;;  %s945_s30 = smov [#allocation4]  }
  0x28   : > { %p781_p3 = scmp.ne.s32.totalorder %s1045_s8, %s780_s29  ;;  %s785_s4 = sshll.u32 %s945_s30, 4  ;;  %s786_s4 = int_to_ptr.vmem [resolvable:$false] %s785_s4 }
  0x29   : > { %s787_s5 = scalar_lea.vmem %s786_s4, 256  ;;  %p788_p9 = scmp.lt.s32.totalorder %s1045_s8, %s786_s4 }
  0x2a   : > { %p783_p6 = pnand %p781_p3, %p767_p5  ;;  %p789_p4 = scmp.lt.s32.totalorder %s787_s5, %s780_s29 }
  0x2c   : > { %p784_p11 = pneg %p783_p6  ;;  %p790_p10 = por %p789_p4, %p788_p9 }
  0x2e   : > { %p791_p12 = pnand %p790_p10, %p784_p11 }
  0x30   : > { %794 = shalt.err (!%p791_p12)
}
  0x31   : > { %695 = dma.hbm_to_vmem [thread:$0]  (!%p1049_p0), %s1043_s6, 128, %s1045_s8, %s180_s10  }
  0x32   : > { %p1264_p1 = scmp.lt.s32.totalorder %s943_s17, 3  ;;  %p1265_p2 = scmp.ge.s32.totalorder %s943_s17, 1 }
  0x33   : > { %s664_s11 = sshll.u32 %s1036_s28, 1  ;;  %s679_s18 = sshll.u32 %s939_s16, 5 }
  0x34   : > { %p1085_p7 = pnand %p1265_p2, %p1264_p1  ;;  %s1094_s22 = scalar_lea.hbm %s1254_s1, %s679_s18 }
  0x35   : > { %s205_s23 = scalar_lea.vmem [#allocation7], %s664_s11  ;;  %s202_s6 = scalar_lea.sflag [#allocation8], %s1036_s28 }
  0x36   : > { %s1266_s7 = scalar_select %p1085_p7, 1, 0 }
  0x37   : > { %s216_s29 = sshll.u32 %s205_s23, 4  ;;  %s795_s8 = scalar_lea.hbm %s1094_s22, 32  ;;  %s217_s29 = int_to_ptr.vmem [resolvable:$true] %s216_s29 }
  0x38   : > { %p796_p9 = scmp.ne.s32.totalorder %s1094_s22, %s795_s8  ;;  %s800_s4 = scalar_lea.hbm %s1254_s1, 64 }
  0x39   : > { %p801_p3 = scmp.lt.u32.totalorder %s1094_s22, %s1254_s1  ;;  %p802_p6 = scmp.lt.u32.totalorder %s800_s4, %s795_s8 }
  0x3a   : > { %p798_p11 = pnand %p796_p9, %p767_p5  ;;  %p804_p10 = scmp.lt.u32.totalorder %s795_s8, %s1094_s22 }
  0x3b   : > { %p803_p4 = por %p802_p6, %p801_p3 }
  0x3c   : > { %p799_p13 = pneg %p798_p11 }
  0x3d   : > { %p805_p12 = por %p804_p10, %p803_p4 }
  0x3f   : > { %p806_p1 = pnand %p805_p12, %p799_p13 }
  0x41   : > { %809 = shalt.err (!%p806_p1)
}
  0x42   : > { %s810_s28 = scalar_lea.vmem %s217_s29, 32  ;;  %s946_s11 = smov [#allocation7]  }
  0x43   : > { %p811_p2 = scmp.ne.s32.totalorder %s217_s29, %s810_s28  ;;  %s815_s19 = sshll.u32 %s946_s11, 4  ;;  %s816_s19 = int_to_ptr.vmem [resolvable:$false] %s815_s19 }
  0x44   : > { %s817_s21 = scalar_lea.vmem %s816_s19, 64  ;;  %p818_p8 = scmp.lt.s32.totalorder %s217_s29, %s816_s19 }
  0x45   : > { %p813_p9 = pnand %p811_p2, %p767_p5  ;;  %p819_p7 = scmp.lt.s32.totalorder %s817_s21, %s810_s28 }
  0x47   : > { %p814_p11 = pneg %p813_p9  ;;  %p820_p3 = por %p819_p7, %p818_p8 }
  0x49   : > { %p821_p6 = pnand %p820_p3, %p814_p11 }
  0x4b   : > { %824 = shalt.err (!%p821_p6)
}
  0x4c   : > { %698 = dma.hbm_to_vmem [thread:$0]  (!%p1049_p0), %s1094_s22, 32, %s217_s29, %s202_s6  }
  0x4d   : > { %p1267_p13 = scmp.ne.s32.totalorder %s1266_s7, 0 }
  0x4e   : > { %s1119_s23 = sand.u32 (!%p1267_p13), 1, %s927_s13   ;;  %p1268_p8 = scmp.ne.s32.totalorder (!%p1267_p13), %s1260_s24, 0 }
  0x4f   : > { %225 = sbr.rel (%p1267_p13) target bundleno = 434 (0x1b2), region = 28  ;;  %s1122_s8 = sshll.u32 (!%p1267_p13), %s1119_s23, 3 }
  0x50   : > { %s228_s10 = scalar_lea.sflag (!%p1267_p13), [#allocation5], %s1119_s23  ;;  %s231_s30 = scalar_lea.vmem (!%p1267_p13), [#allocation4], %s1122_s8 }
  0x56   : > { %906 = dma.done.wait (%p1268_p8), %s228_s10, 128  }
  0x57   : > { %908 = vsyncadd (%p1268_p8), %s228_s10, 4294967168  ;;  %s669_s9 = sshll.u32 %s1119_s23, 1  ;;  %s237_s7 = scalar_lea.sflag [#allocation8], %s1119_s23 }
  0x58   : > { %s1132_s22 = scalar_lea.vmem [#allocation7], %s669_s9 }
  0x59   : > { %910 = dma.done.wait (%p1268_p8), %s237_s7, 32  }
  0x5a   : > { %912 = vsyncadd (%p1268_p8), %s237_s7, 4294967264  ;;  %v281_v0 = vlaneseq  ;;  %v947_v2 = vmov 0.0   ;;  %vm294_vm1 = vcmask 1043456   ;;  %v287_v3 = vld [vmem:[%s231_s30] sm:$0xff]  ;;  %v288_v38 = vld [vmem:[%s1132_s22] sm:$0x3] }
  0x5b   : > { %v292_v4 = vcombine.high %v287_v3, %v287_v3  ;;  %v295_v5 = vsel %vm294_vm1, %v287_v3, -inf  ;;  %v289_v39 = vunpack.c.0.s8 %v288_v38  ;;  %v948_v60 = vmov 1966171168   ;;  %s674_s24 = sshll.u32 %s935_s15, 7  ;;  %s265_s29 = scalar_lea.vmem [#allocation9], %s1122_s8 }
  0x5c   : > { %vm1139_vm0 = vcmp.lt.s32.totalorder %v281_v0, 256  ;;  %v296_v6 = vrot.slane %v295_v5, 4  ;;  %v363_v61 = vunpack.c.l.s4 %v948_v60  ;;  %vm436_vm2 = vcmask 1040384   ;;  %s497_s6 = sshll.u32 %s265_s29, 4  ;;  %s272_s4 = scalar_lea.vmem [#allocation10], %s1122_s8  ;;  %s1173_s6 = int_to_ptr.vmem [resolvable:$true] %s497_s6 }
  0x5d   : > { %285 = vst.msk [vmem:[#allocation2] sm:$0x3] %vm1139_vm0, %v947_v2  ;;  %286 = vst.msk [vmem:[#allocation3] sm:$0x3] %vm1139_vm0, %v947_v2  ;;  %v302_v7 = vsel %vm294_vm1, %v292_v4, -inf  ;;  %v290_v42 = vcvt.s32.f32 %v289_v39  ;;  %s511_s5 = sshll.u32 %s272_s4, 4  ;;  %s1171_s11 = scalar_lea.hbm %s1255_s2, %s674_s24  ;;  %s1175_s5 = int_to_ptr.vmem [resolvable:$true] %s511_s5 }
  0x5e   : > { %v297_v8 = vmax.f32 %v295_v5, %v296_v6  ;;  %v303_v9 = vrot.slane %v302_v7, 4  ;;  %s478_s21 = scalar_lea.sflag [#allocation6], %s1119_s23  ;;  %s825_s10 = scalar_lea.vmem %s1173_s6, 128 }
  0x5f   : > { %p826_p0 = scmp.ne.s32.totalorder %s1173_s6, %s825_s10  ;;  %p1271_p5 = scmp.ne.s32.totalorder %s1261_s25, 0 }
  0x60   : > { %v298_v10 = vrot.slane %v297_v8, 2  ;;  %v304_v11 = vmax.f32 %v302_v7, %v303_v9  ;;  %v366_v9 = vshrl.u32 %v281_v0, 7  ;;  %s949_s30 = smov [#allocation9]  }
  0x61   : > { %p827_p7 = pnand %p826_p0, %p1271_p5  ;;  %s829_s9 = sshll.u32 %s949_s30, 4  ;;  %s830_s9 = int_to_ptr.vmem [resolvable:$false] %s829_s9 }
  0x62   : > { %v299_v12 = vmax.f32 %v297_v8, %v298_v10  ;;  %v305_v13 = vrot.slane %v304_v11, 2  ;;  %v364_v8 = vunpack.c.0.s8 %v363_v61  ;;  %v428_v0 = vsub.s32 0, %v366_v9  ;;  %s831_s7 = scalar_lea.vmem %s830_s9, 256  ;;  %p832_p10 = scmp.lt.s32.totalorder %s1173_s6, %s830_s9 }
  0x63   : > { %p828_p4 = pneg %p827_p7  ;;  %p833_p12 = scmp.lt.s32.totalorder %s831_s7, %s825_s10 }
  0x64   : > { %v300_v14 = vrot.slane %v299_v12, 1  ;;  %v306_v15 = vmax.f32 %v304_v11, %v305_v13 }
  0x65   : > { %p834_p1 = por %p833_p12, %p832_p10 }
  0x66   : > { %v301_v16 = vmax.f32 %v299_v12, %v300_v14  ;;  %v307_v17 = vrot.slane %v306_v15, 1 }
  0x67   : > { %p835_p2 = pnand %p834_p1, %p828_p4 }
  0x68   : > { %v308_v18 = vmax.f32 %v306_v15, %v307_v17 }
  0x6a   : > { %v311_v19 = vcombine.low %v301_v16, %v308_v18  ;;  %v367_v18 = vsub.s32 %v364_v8, %v366_v9 }
  0x6c   : > { %v313_v20 = vsub.f32 %v287_v3, %v311_v19 }
  0x6e   : > { %v314_v21 = vmul.f32 1.442695, %v313_v20 }
  0x70   : > { %759 = vpow2.f32 %v314_v21 }
  0x7a   : > { %v760_v22 = vpop.eup %759 }
  0x7b   : > { %v317_v23 = vcombine.high %v760_v22, %v760_v22  ;;  %v319_v24 = vsel %vm294_vm1, %v760_v22, 0.0 }
  0x7c   : > { %v320_v25 = vrot.slane %v319_v24, 4 }
  0x7d   : > { %v326_v26 = vsel %vm294_vm1, %v317_v23, 0.0 }
  0x7e   : > { %v321_v27 = vadd.f32 %v320_v25, %v319_v24  ;;  %v327_v28 = vrot.slane %v326_v26, 4  ;;  %v340_v25 = vld [vmem:[#allocation2] sm:$0x3] }
  0x80   : > { %v322_v29 = vrot.slane %v321_v27, 2  ;;  %v328_v30 = vadd.f32 %v327_v28, %v326_v26 }
  0x82   : > { %v323_v31 = vadd.f32 %v322_v29, %v321_v27  ;;  %v329_v32 = vrot.slane %v328_v30, 2  ;;  %v432_v29 = vsub.s32 1, %v366_v9 }
  0x84   : > { %v324_v33 = vrot.slane %v323_v31, 1  ;;  %v330_v34 = vadd.f32 %v329_v32, %v328_v30 }
  0x86   : > { %v325_v35 = vadd.f32 %v324_v33, %v323_v31  ;;  %v331_v36 = vrot.slane %v330_v34, 1 }
  0x88   : > { %v332_v37 = vadd.f32 %v331_v36, %v330_v34  ;;  %761 = vrcp.f32 %v325_v35 }
  0x8a   : > { %763 = vrcp.f32 %v332_v37 }
  0x92   : > { %v762_v40 = vpop.eup %761 }
  0x94   : > { %v764_v41 = vpop.eup %763 }
  0x95   : > { %v337_v43 = vcombine.low %v762_v40, %v764_v41 }
  0x97   : > { %v339_v44 = vmul.f32 %v760_v22, %v337_v43  ;;  %v400_v22 = vld [vmem:[#allocation3] sm:$0x3] }
  0x99   : > { %v341_v45 = vmul.f32 %v339_v44, %v290_v42  ;;  %v384_v46 = vcombine.high %v339_v44, %v339_v44  ;;  %v386_v47 = vsel %vm294_vm1, %v339_v44, 0.0 }
  0x9a   : > { %v387_v48 = vrot.slane %v386_v47, 4 }
  0x9b   : > { %v343_v49 = vcombine.high %v341_v45, %v341_v45  ;;  %v345_v50 = vsel %vm294_vm1, %v341_v45, 0.0  ;;  %v393_v51 = vsel %vm294_vm1, %v384_v46, 0.0 }
  0x9c   : > { %v346_v52 = vrot.slane %v345_v50, 4  ;;  %v388_v53 = vadd.f32 %v387_v48, %v386_v47  ;;  %v394_v54 = vrot.slane %v393_v51, 4 }
  0x9d   : > { %v352_v55 = vsel %vm294_vm1, %v343_v49, 0.0 }
  0x9e   : > { %v347_v56 = vadd.f32 %v346_v52, %v345_v50  ;;  %v353_v57 = vrot.slane %v352_v55, 4  ;;  %v389_v58 = vrot.slane %v388_v53, 2  ;;  %v395_v59 = vadd.f32 %v394_v54, %v393_v51 }
  0xa0   : > { %v348_v62 = vrot.slane %v347_v56, 2  ;;  %v354_v63 = vadd.f32 %v353_v57, %v352_v55  ;;  %v390_v2 = vadd.f32 %v389_v58, %v388_v53  ;;  %v396_v3 = vrot.slane %v395_v59, 2 }
  0xa2   : > { %v349_v4 = vadd.f32 %v348_v62, %v347_v56  ;;  %v355_v5 = vrot.slane %v354_v63, 2  ;;  %v391_v6 = vrot.slane %v390_v2, 1  ;;  %v397_v7 = vadd.f32 %v396_v3, %v395_v59 }
  0xa4   : > { %v350_v10 = vrot.slane %v349_v4, 1  ;;  %v356_v11 = vadd.f32 %v355_v5, %v354_v63  ;;  %v392_v12 = vadd.f32 %v391_v6, %v390_v2  ;;  %v398_v13 = vrot.slane %v397_v7, 1 }
  0xa6   : > { %v351_v14 = vadd.f32 %v350_v10, %v349_v4  ;;  %v357_v15 = vrot.slane %v356_v11, 1  ;;  %v399_v16 = vadd.f32 %v398_v13, %v397_v7 }
  0xa8   : > { %v358_v17 = vadd.f32 %v357_v15, %v356_v11  ;;  %v403_v19 = vcombine.low %v392_v12, %v399_v16 }
  0xaa   : > { %v361_v20 = vcombine.low %v351_v14, %v358_v17  ;;  %v410_v21 = vrot.slane %v403_v19, %v367_v18 }
  0xac   : > { %v368_v23 = vrot.slane %v361_v20, %v367_v18  ;;  %v417_v24 = vrot.slane %v410_v21, %v367_v18 }
  0xae   : > { %v375_v26 = vrot.slane %v368_v23, %v367_v18  ;;  %v419_v27 = vadd.f32 %v417_v24, %v400_v22 }
  0xb0   : > { %v377_v28 = vadd.f32 %v375_v26, %v340_v25  ;;  %420 = vst.msk [vmem:[#allocation3] sm:$0x3] %vm1139_vm0, %v419_v27 }
  0xb2   : > { %382 = vst.msk [vmem:[#allocation2] sm:$0x3] %vm1139_vm0, %v377_v28 }
  0xb7   : > { %v451_v30 = vld [vmem:[#allocation3] sm:$0x3] }
  0xb8   : > { %v456_v31 = vrot.slane %v451_v30, %v428_v0  ;;  %v460_v32 = vrot.slane %v451_v30, %v432_v29 }
  0xb9   : > { %v424_v33 = vld [vmem:[#allocation2] sm:$0x3] }
  0xba   : > { %v429_v34 = vrot.slane %v424_v33, %v428_v0  ;;  %v433_v35 = vrot.slane %v424_v33, %v432_v29  ;;  %v463_v38 = vsel %vm436_vm2, %v456_v31, 0.0  ;;  %v464_v39 = vsel %vm436_vm2, %v460_v32, 0.0 }
  0xbb   : > { %v465_v41 = vadd.f32 %v464_v39, %v463_v38 }
  0xbc   : > { %v437_v36 = vsel %vm436_vm2, %v429_v34, 0.0  ;;  %v438_v37 = vsel %vm436_vm2, %v433_v35, 0.0 }
  0xbd   : > { %v439_v40 = vadd.f32 %v438_v37, %v437_v36 }
  0xbf   : > { %440 = vadd.xlane.f32.xlu0 %v439_v40 }
  0xc3   : > { %466 = vadd.xlane.f32.xlu0 %v465_v41 }
 0x14c   : > { %v441_v42 = vpop.xlane.xlu0 %440 }
 0x14d   : > { %v442_v1 = vrot.slane %v441_v42, 4 }
 0x14f   : > { %v443_v43 = vadd.f32 %v442_v1, %v441_v42 }
 0x150   : > { %v467_v44 = vpop.xlane.xlu0 %466 }
 0x151   : > { %v444_v45 = vrot.slane %v443_v43, 2  ;;  %v468_v46 = vrot.slane %v467_v44, 4 }
 0x153   : > { %v469_v47 = vadd.f32 %v468_v46, %v467_v44  ;;  %v445_v48 = vadd.f32 %v444_v45, %v443_v43 }
 0x155   : > { %v470_v49 = vrot.slane %v469_v47, 2  ;;  %v446_v50 = vrot.slane %v445_v48, 1 }
 0x157   : > { %v471_v51 = vadd.f32 %v470_v49, %v469_v47  ;;  %v447_v52 = vadd.f32 %v446_v50, %v445_v48 }
 0x159   : > { %680 = vpush %v447_v52  ;;  %v472_v53 = vrot.slane %v471_v51, 1 }
 0x15b   : > { %v473_v54 = vadd.f32 %v472_v53, %v471_v51 }
 0x15d   : > { %682 = vpush %v473_v54 }
 0x18a   : > { %s681_s19 = spop %680 }
 0x18b   : > { %v449_v55 = vstv %s681_s19 }
 0x18c   : > { %450 = vst [vmem:[%s265_s29] sm:$0xff] %v449_v55 }
 0x18d   : > { %838 = shalt.err (!%p835_p2)
}
 0x18e   : > { %s839_s22 = scalar_lea.hbm %s1171_s11, 128  ;;  %s843_s28 = scalar_lea.hbm %s1255_s2, 256 }
 0x18f   : > { %p840_p9 = scmp.ne.s32.totalorder %s1171_s11, %s839_s22  ;;  %p844_p6 = scmp.lt.u32.totalorder %s1171_s11, %s1255_s2 }
 0x190   : > { %p845_p13 = scmp.lt.u32.totalorder %s843_s28, %s839_s22  ;;  %p847_p0 = scmp.lt.u32.totalorder %s839_s22, %s1171_s11 }
 0x191   : > { %p841_p11 = pnand %p840_p9, %p1271_p5 }
 0x192   : > { %p846_p8 = por %p845_p13, %p844_p6 }
 0x193   : > { %p842_p3 = pneg %p841_p11 }
 0x194   : > { %p848_p7 = por %p847_p0, %p846_p8 }
 0x196   : > { %p849_p4 = pnand %p848_p7, %p842_p3 }
 0x198   : > { %852 = shalt.err (!%p849_p4)
}
 0x199   : > { %688 = dma.vmem_to_hbm [thread:$0]  (%p1271_p5), %s1173_s6, 128, %s1171_s11, %s478_s21  }
 0x19a   : > { %s683_s10 = spop %682  ;;  %s1204_s22 = scalar_lea.hbm %s1256_s3, %s674_s24 }
 0x19b   : > { %v475_v56 = vstv %s683_s10  ;;  %s483_s29 = scalar_lea.sflag [#allocation11], %s1119_s23  ;;  %s853_s18 = scalar_lea.vmem %s1175_s5, 128 }
 0x19c   : > { %476 = vst [vmem:[%s272_s4] sm:$0xff] %v475_v56  ;;  %p854_p10 = scmp.ne.s32.totalorder %s1175_s5, %s853_s18  ;;  %s950_s28 = smov [#allocation10]  }
 0x19d   : > { %s857_s19 = sshll.u32 %s950_s28, 4  ;;  %s858_s19 = int_to_ptr.vmem [resolvable:$false] %s857_s19 }
 0x19e   : > { %p855_p12 = pnand %p854_p10, %p1271_p5  ;;  %s859_s6 = scalar_lea.vmem %s858_s19, 256 }
 0x19f   : > { %p860_p2 = scmp.lt.s32.totalorder %s1175_s5, %s858_s19  ;;  %p861_p9 = scmp.lt.s32.totalorder %s859_s6, %s853_s18 }
 0x1a0   : > { %p856_p1 = pneg %p855_p12 }
 0x1a1   : > { %p862_p11 = por %p861_p9, %p860_p2 }
 0x1a3   : > { %p863_p3 = pnand %p862_p11, %p856_p1 }
 0x1a5   : > { %866 = shalt.err (!%p863_p3)
}
 0x1a6   : > { %s867_s15 = scalar_lea.hbm %s1204_s22, 128  ;;  %s871_s24 = scalar_lea.hbm %s1256_s3, 256 }
 0x1a7   : > { %p868_p6 = scmp.ne.s32.totalorder %s1204_s22, %s867_s15  ;;  %p872_p0 = scmp.lt.u32.totalorder %s1204_s22, %s1256_s3 }
 0x1a8   : > { %p873_p7 = scmp.lt.u32.totalorder %s871_s24, %s867_s15  ;;  %p875_p10 = scmp.lt.u32.totalorder %s867_s15, %s1204_s22 }
 0x1a9   : > { %p869_p13 = pnand %p868_p6, %p1271_p5 }
 0x1aa   : > { %p874_p4 = por %p873_p7, %p872_p0 }
 0x1ab   : > { %p870_p8 = pneg %p869_p13 }
 0x1ac   : > { %p876_p12 = por %p875_p10, %p874_p4 }
 0x1ae   : > { %p877_p1 = pnand %p876_p12, %p870_p8 }
 0x1b0   : > { %880 = shalt.err (!%p877_p1)
}
 0x1b1   : > { %689 = dma.vmem_to_hbm [thread:$0]  (%p1271_p5), %s1175_s5, 128, %s1204_s22, %s483_s29  }
 0x1b2 PF: > { %s523_s21 = sand.u32 1, %s923_s12   ;;  %p1272_p2 = scmp.ne.s32.totalorder %s1262_s27, 0 }
 0x1b3   : > { %p1273_p9 = scmp.ge.s32.totalorder %s943_s17, 2  ;;  %s524_s30 = scalar_lea.sflag [#allocation6], %s523_s21 }
 0x1b5   : > { %p700_p11 = pnand %p1273_p9, %p1272_p2 }
 0x1b7   : > { %914 = dma.done.wait (!%p700_p11), %s524_s30, 128  }
 0x1b8   : > { %916 = vsyncadd (!%p700_p11), %s524_s30, 4294967168  ;;  %s533_s10 = scalar_lea.sflag [#allocation11], %s523_s21 }
 0x1b9   : > { %918 = dma.done.wait (!%p700_p11), %s533_s10, 128  }
 0x1ba   : > { %920 = vsyncadd (!%p700_p11), %s533_s10, 4294967168  ;;  %s26_s17 = sadd.s32 1, %s943_s17   ;;  %s1274_s12 = smov %s927_s13 }
 0x1bb   : > { %p23_p3 = scmp.ge.s32.totalorder %s26_s17, 4   ;;  %s1275_s13 = smov %s931_s14 }
 0x1bc   : > { %s1276_s14 = smov %s1027_s26  ;;  %s1277_s15 = smov %s939_s16 }
 0x1bd   : > { %s1278_s16 = smov %s1280_s20  ;;  %25 = sbr.rel (!%p23_p3) target bundleno = 10 (0xa), region = 111 }
 0x1c4   :  { %538 = vsyncpa [#allocation5], 1 }
 0x1c5   :  { %540 = vsyncpa [#allocation5 + $0x1], 1 }
 0x1c6   :  { %541 = vsyncpa [#allocation8], 1 }
 0x1c7   :  { %543 = vsyncpa [#allocation8 + $0x1], 1 }
 0x1c8   :  { %544 = vsyncpa [#allocation6], 1 }
 0x1c9   :  { %546 = vsyncpa [#allocation6 + $0x1], 1 }
 0x1ca   :  { %547 = vsyncpa [#allocation11], 1 }
 0x1cb   :  { %549 = vsyncpa [#allocation11 + $0x1], 1 }

</bundles_post_ra>
